<compile_context>
chip_gen: v7x
topology: tpu7x:2x2x1
jax: 0.10.0
libtpu: 0.0.40
codegen_flags: <defaults>
</compile_context>

<pallas_src>
import functools

import jax
import jax.numpy as jnp
from jax.experimental import pallas as pl
from jax.experimental.pallas import tpu as pltpu


def _ls_ce_kernel(x_ref, t_ref, out_ref, acc_ref, *, smoothing, n_rows,
                  block_rows, tiles_per_part):
    p = pl.program_id(0)          # partial-sum index ("parallel" axis)
    i = pl.program_id(1)          # row-tile index within the part ("arbitrary")

    @pl.when(i == 0)
    def _zero_acc():
        acc_ref[...] = jnp.zeros_like(acc_ref)

    x = x_ref[...].astype(jnp.float32)              # (TN, C)
    t = t_ref[...]                                  # (TN, 1) int32
    tn, c = x.shape

    # Global row ids from the *unclamped* virtual tile index: rows past the
    # true N (ragged last tile, or clamped virtual tiles of the parallel
    # split) are masked out of the sum.
    tile = p * tiles_per_part + i
    row_ids = tile * block_rows + jax.lax.broadcasted_iota(jnp.int32, (tn, 1), 0)
    valid = row_ids < n_rows                        # (TN, 1)

    # Sanitize masked rows before the transcendental math (their block data is
    # undefined) so no inf/nan can reach the masked, accumulated sum.
    x = jnp.where(valid, x, 0.0)

    # Per-row scalars only — never materialize logprobs.
    m = jnp.max(x, axis=-1, keepdims=True)                              # (TN,1)
    lse = jnp.log(jnp.sum(jnp.exp(x - m), axis=-1, keepdims=True)) + m  # logsumexp
    sum_x = jnp.sum(x, axis=-1, keepdims=True)                          # (TN,1)
    cls = jax.lax.broadcasted_iota(jnp.int32, (tn, c), 1)
    x_t = jnp.sum(jnp.where(cls == t, x, 0.0), axis=-1, keepdims=True)  # x[target]

    nll_loss = lse - x_t                       # -logprobs.gather(-1, target)
    smooth_loss = lse - sum_x * (1.0 / c)      # -logprobs.mean(-1)
    loss = (1.0 - smoothing) * nll_loss + smoothing * smooth_loss
    loss = jnp.where(valid, loss, 0.0)

    acc_ref[...] += jnp.sum(loss)

    @pl.when(i == pl.num_programs(1) - 1)
    def _flush():
        out_ref[...] = acc_ref[...]


def _choose_block_rows(n_rows, n_classes, in_itemsize):
    # Working-set budget per grid step: 2 pipeline buffers of the raw input
    # tile plus ~4 f32-sized (TN, C) temporaries for the in-kernel math.
    # Kept well under the 32 MiB vmem limit so it is also safe for v7x's
    # 64 MiB physical VMEM (don't reuse a v6e-tuned pair blindly).
    budget = 16 * 1024 * 1024
    per_row = n_classes * (2 * in_itemsize + 4 * 4) + 16
    tn = budget // per_row
    tn = min(tn, 4096)
    if tn >= n_rows:
        return n_rows                      # full extent is always a legal block
    return max(8, (tn // 8) * 8)           # second-minor block dim: 8-divisible


def label_smoothing_cross_entropy(x, target, smoothing=0.1, *,
                                  block_rows=None, num_parts=2):
    """x: (N, C) float (f32/bf16), target: (N,) int. Returns scalar f32 loss."""
    n, c = x.shape
    t2d = target.astype(jnp.int32).reshape(n, 1)

    if block_rows is None:
        tn = _choose_block_rows(n, c, x.dtype.itemsize)
    else:
        tn = min(int(block_rows), n)
        if tn < n:
            tn = max(8, (tn // 8) * 8)

    num_tiles = pl.cdiv(n, tn)
    num_parts = max(1, min(int(num_parts), num_tiles))
    tiles_per_part = pl.cdiv(num_tiles, num_parts)

    # Clamp the DMA'd tile index so virtual (over-provisioned) tiles of the
    # parallel split never read out of bounds; their rows are masked anyway.
    def x_map(p, i):
        return (jnp.minimum(p * tiles_per_part + i, num_tiles - 1), 0)

    def t_map(p, i):
        return (jnp.minimum(p * tiles_per_part + i, num_tiles - 1), 0)

    def o_map(p, i):
        return (p, 0, 0)

    kernel = functools.partial(
        _ls_ce_kernel,
        smoothing=float(smoothing),
        n_rows=n,
        block_rows=tn,
        tiles_per_part=tiles_per_part,
    )

    cost = pl.CostEstimate(
        flops=6 * n * c,
        transcendentals=n * c + n,
        bytes_accessed=n * c * x.dtype.itemsize + n * 4 + num_parts * 4,
    )

    partials = pl.pallas_call(
        kernel,
        out_shape=jax.ShapeDtypeStruct((num_parts, 1, 1), jnp.float32),
        grid_spec=pltpu.PrefetchScalarGridSpec(
            num_scalar_prefetch=0,
            grid=(num_parts, tiles_per_part),
            in_specs=[
                pl.BlockSpec((tn, c), x_map),   # C stays whole (unblocked)
                pl.BlockSpec((tn, 1), t_map),
            ],
            out_specs=pl.BlockSpec((1, 1, 1), o_map),
            scratch_shapes=[pltpu.VMEM((1, 1, 1), jnp.float32)],
        ),
        compiler_params=pltpu.CompilerParams(
            dimension_semantics=("parallel", "arbitrary"),
            vmem_limit_bytes=32 * 1024 * 1024,
        ),
        cost_estimate=cost,
    )(x, t2d)

    # Tiny cross-part reduction + the final mean over the true N.
    return jnp.sum(partials) * (1.0 / n)


def _reference(x, target, smoothing=0.1):
    logprobs = jax.nn.log_softmax(x.astype(jnp.float32), axis=-1)
    nll = -jnp.take_along_axis(
        logprobs, target.astype(jnp.int32)[:, None], axis=-1)[:, 0]
    smooth = -jnp.mean(logprobs, axis=-1)
    return jnp.mean((1.0 - smoothing) * nll + smoothing * smooth)


if __name__ == "__main__":
    key = jax.random.PRNGKey(0)
    kx, kt, kx2, kt2 = jax.random.split(key, 4)

    # Small case matching the module's usage (logits over classes per sample).
    N, C = 8, 32
    x = jax.random.normal(kx, (N, C), dtype=jnp.float32)
    tgt = jax.random.randint(kt, (N,), 0, C, dtype=jnp.int32)
    loss = label_smoothing_cross_entropy(x, tgt, smoothing=0.1)
    jax.block_until_ready(loss)
    ref = _reference(x, tgt, 0.1)
    assert jnp.allclose(loss, ref, atol=1e-5, rtol=1e-4), (loss, ref)

    # Bigger ragged case exercising row tiling, the 2-way parallel partial
    # sums, clamped virtual tiles and the padded-row mask.
    N2, C2 = 200, 160
    x2 = jax.random.normal(kx2, (N2, C2), dtype=jnp.float32)
    tgt2 = jax.random.randint(kt2, (N2,), 0, C2, dtype=jnp.int32)
    loss2 = label_smoothing_cross_entropy(x2, tgt2, smoothing=0.1,
                                          block_rows=32, num_parts=2)
    jax.block_until_ready(loss2)
    ref2 = _reference(x2, tgt2, 0.1)
    assert jnp.allclose(loss2, ref2, atol=1e-5, rtol=1e-4), (loss2, ref2)

    # bf16 inputs stream at half the HBM bytes; math stays f32 in the kernel.
    x3 = x2.astype(jnp.bfloat16)
    loss3 = label_smoothing_cross_entropy(x3, tgt2, smoothing=0.1,
                                          block_rows=64, num_parts=2)
    jax.block_until_ready(loss3)
    ref3 = _reference(x3, tgt2, 0.1)   # reference on the same bf16-rounded values
    assert jnp.allclose(loss3, ref3, atol=1e-4, rtol=1e-3), (loss3, ref3)

    print("KERNEL_OK")
</pallas_src>

<mosaic_0001>
module attributes {stable_mosaic.version = 11 : i64} {
  func.func @_ls_ce_kernel(%arg0: i32, %arg1: i32, %arg2: memref<8x32xf32, #tpu.memory_space<vmem>>, %arg3: memref<8x1xi32, #tpu.memory_space<vmem>>, %arg4: memref<1x1x1xf32, #tpu.memory_space<vmem>>, %arg5: memref<1x1x1xf32, #tpu.memory_space<vmem>>) attributes {dimension_semantics = [#tpu.dimension_semantics<parallel>, #tpu.dimension_semantics<arbitrary>], iteration_bounds = array<i64: 1, 1>, scalar_prefetch = 0 : i64, scratch_operands = 1 : i64, tpu.core_type = #tpu.core_type<tc>, window_params = [{transform_indices = @transform_0, window_bounds = array<i64: 8, 32>}, {transform_indices = @transform_1, window_bounds = array<i64: 8, 1>}, {transform_indices = @transform_2, window_bounds = array<i64: 1, 1, 1>}]} {
    %c0_i32 = arith.constant 0 : i32
    %0 = arith.cmpi eq, %arg1, %c0_i32 : i32
    %1 = arith.extui %0 : i1 to i32
    %c0_i32_0 = arith.constant 0 : i32
    %2 = arith.cmpi ne, %1, %c0_i32_0 : i32
    scf.if %2 {
      %cst_23 = arith.constant 0.000000e+00 : f32
      %57 = vector.broadcast %cst_23 : f32 to vector<1x1x1xf32>
      %c0_24 = arith.constant 0 : index
      %c0_25 = arith.constant 0 : index
      %c0_26 = arith.constant 0 : index
      %58 = vector.load %arg5[%c0_24, %c0_25, %c0_26] : memref<1x1x1xf32, #tpu.memory_space<vmem>>, vector<1x1x1xf32>
      tpu.vector_store %arg5[%c0_24, %c0_25, %c0_26], %57 {strides = array<i32>} : memref<1x1x1xf32, #tpu.memory_space<vmem>>, vector<1x1x1xf32>,
    } else {
    }
    %c0 = arith.constant 0 : index
    %c0_1 = arith.constant 0 : index
    %3 = vector.load %arg2[%c0, %c0_1] : memref<8x32xf32, #tpu.memory_space<vmem>>, vector<8x32xf32>
    %c0_2 = arith.constant 0 : index
    %c0_3 = arith.constant 0 : index
    %4 = vector.load %arg3[%c0_2, %c0_3] : memref<8x1xi32, #tpu.memory_space<vmem>>, vector<8x1xi32>
    %c1_i32 = arith.constant 1 : i32
    %5 = arith.muli %arg0, %c1_i32 : i32
    %6 = arith.addi %5, %arg1 : i32
    %c8_i32 = arith.constant 8 : i32
    %7 = arith.muli %6, %c8_i32 : i32
    %8 = tpu.iota {dimensions = array<i32: 0>} : vector<8x1xi32>
    %9 = vector.broadcast %7 : i32 to vector<8x1xi32>
    %10 = arith.addi %9, %8 : vector<8x1xi32>
    %c8_i32_4 = arith.constant 8 : i32
    %11 = vector.broadcast %c8_i32_4 : i32 to vector<8x1xi32>
    %12 = arith.cmpi slt, %10, %11 : vector<8x1xi32>
    %cst = arith.constant 0.000000e+00 : f32
    %13 = vector.shape_cast %12 : vector<8x1xi1> to vector<8x1xi1>
    %14 = vector.broadcast %13 : vector<8x1xi1> to vector<8x32xi1>
    %15 = vector.broadcast %cst : f32 to vector<8x32xf32>
    %16 = arith.select %14, %3, %15 : vector<8x32xi1>, vector<8x32xf32>
    %cst_5 = arith.constant dense<0xFF800000> : vector<8xf32>
    %17 = vector.multi_reduction <maximumf>, %16, %cst_5 [1] : vector<8x32xf32> to vector<8xf32>
    %18 = vector.shape_cast %17 : vector<8xf32> to vector<8x1xf32>
    %19 = vector.broadcast %18 : vector<8x1xf32> to vector<8x32xf32>
    %20 = arith.subf %16, %19 : vector<8x32xf32>
    %21 = math.exp %20 : vector<8x32xf32>
    %cst_6 = arith.constant dense<0.000000e+00> : vector<8xf32>
    %22 = vector.multi_reduction <add>, %21, %cst_6 [1] : vector<8x32xf32> to vector<8xf32>
    %23 = vector.shape_cast %22 : vector<8xf32> to vector<8x1xf32>
    %24 = math.log %23 : vector<8x1xf32>
    %25 = arith.addf %24, %18 : vector<8x1xf32>
    %cst_7 = arith.constant dense<0.000000e+00> : vector<8xf32>
    %26 = vector.multi_reduction <add>, %16, %cst_7 [1] : vector<8x32xf32> to vector<8xf32>
    %27 = vector.shape_cast %26 : vector<8xf32> to vector<8x1xf32>
    %28 = tpu.iota {dimensions = array<i32: 1>} : vector<8x32xi32>
    %29 = vector.broadcast %4 : vector<8x1xi32> to vector<8x32xi32>
    %30 = arith.cmpi eq, %28, %29 : vector<8x32xi32>
    %cst_8 = arith.constant 0.000000e+00 : f32
    %31 = vector.broadcast %cst_8 : f32 to vector<8x32xf32>
    %32 = arith.select %30, %16, %31 : vector<8x32xi1>, vector<8x32xf32>
    %cst_9 = arith.constant dense<0.000000e+00> : vector<8xf32>
    %33 = vector.multi_reduction <add>, %32, %cst_9 [1] : vector<8x32xf32> to vector<8xf32>
    %34 = vector.shape_cast %33 : vector<8xf32> to vector<8x1xf32>
    %35 = arith.subf %25, %34 : vector<8x1xf32>
    %cst_10 = arith.constant 3.125000e-02 : f32
    %36 = vector.broadcast %cst_10 : f32 to vector<8x1xf32>
    %37 = arith.mulf %27, %36 : vector<8x1xf32>
    %38 = arith.subf %25, %37 : vector<8x1xf32>
    %cst_11 = arith.constant 0.899999976 : f32
    %39 = vector.broadcast %cst_11 : f32 to vector<8x1xf32>
    %40 = arith.mulf %39, %35 : vector<8x1xf32>
    %cst_12 = arith.constant 1.000000e-01 : f32
    %41 = vector.broadcast %cst_12 : f32 to vector<8x1xf32>
    %42 = arith.mulf %41, %38 : vector<8x1xf32>
    %43 = arith.addf %40, %42 : vector<8x1xf32>
    %cst_13 = arith.constant 0.000000e+00 : f32
    %44 = vector.broadcast %cst_13 : f32 to vector<8x1xf32>
    %45 = arith.select %12, %43, %44 : vector<8x1xi1>, vector<8x1xf32>
    %c0_14 = arith.constant 0 : index
    %c0_15 = arith.constant 0 : index
    %c0_16 = arith.constant 0 : index
    %46 = vector.load %arg5[%c0_14, %c0_15, %c0_16] : memref<1x1x1xf32, #tpu.memory_space<vmem>>, vector<1x1x1xf32>
    %47 = vector.shape_cast %45 : vector<8x1xf32> to vector<1x8x1xf32>
    %cst_17 = arith.constant dense<0.000000e+00> : vector<1xf32>
    %48 = vector.multi_reduction <add>, %47, %cst_17 [1, 2] : vector<1x8x1xf32> to vector<1xf32>
    %49 = vector.shape_cast %48 : vector<1xf32> to vector<1x1x1xf32>
    %50 = vector.extract %49[0, 0, 0] : f32 from vector<1x1x1xf32>
    %51 = vector.broadcast %50 : f32 to vector<1x1x1xf32>
    %52 = arith.addf %46, %51 : vector<1x1x1xf32>
    %c0_18 = arith.constant 0 : index
    %c0_19 = arith.constant 0 : index
    %c0_20 = arith.constant 0 : index
    %53 = vector.load %arg5[%c0_18, %c0_19, %c0_20] : memref<1x1x1xf32, #tpu.memory_space<vmem>>, vector<1x1x1xf32>
    tpu.vector_store %arg5[%c0_18, %c0_19, %c0_20], %52 {strides = array<i32>} : memref<1x1x1xf32, #tpu.memory_space<vmem>>, vector<1x1x1xf32>,
    %c0_i32_21 = arith.constant 0 : i32
    %54 = arith.cmpi eq, %arg1, %c0_i32_21 : i32
    %55 = arith.extui %54 : i1 to i32
    %c0_i32_22 = arith.constant 0 : i32
    %56 = arith.cmpi ne, %55, %c0_i32_22 : i32
    scf.if %56 {
      %c0_23 = arith.constant 0 : index
      %c0_24 = arith.constant 0 : index
      %c0_25 = arith.constant 0 : index
      %57 = vector.load %arg5[%c0_23, %c0_24, %c0_25] : memref<1x1x1xf32, #tpu.memory_space<vmem>>, vector<1x1x1xf32>
      %c0_26 = arith.constant 0 : index
      %c0_27 = arith.constant 0 : index
      %c0_28 = arith.constant 0 : index
      %58 = vector.load %arg4[%c0_26, %c0_27, %c0_28] : memref<1x1x1xf32, #tpu.memory_space<vmem>>, vector<1x1x1xf32>
      tpu.vector_store %arg4[%c0_26, %c0_27, %c0_28], %57 {strides = array<i32>} : memref<1x1x1xf32, #tpu.memory_space<vmem>>, vector<1x1x1xf32>,
    } else {
    }
    return
  }
  func.func @transform_0(%arg0: i32, %arg1: i32) -> (i32, i32) {
    %c1_i32 = arith.constant 1 : i32
    %0 = arith.muli %arg0, %c1_i32 : i32
    %1 = arith.addi %0, %arg1 : i32
    %c0_i32 = arith.constant 0 : i32
    %2 = arith.minsi %1, %c0_i32 : i32
    %c0_i32_0 = arith.constant 0 : i32
    %c0_i32_1 = arith.constant 0 : i32
    return %2, %c0_i32_0 : i32, i32
  }
  func.func @transform_1(%arg0: i32, %arg1: i32) -> (i32, i32) {
    %c1_i32 = arith.constant 1 : i32
    %0 = arith.muli %arg0, %c1_i32 : i32
    %1 = arith.addi %0, %arg1 : i32
    %c0_i32 = arith.constant 0 : i32
    %2 = arith.minsi %1, %c0_i32 : i32
    %c0_i32_0 = arith.constant 0 : i32
    %c0_i32_1 = arith.constant 0 : i32
    return %2, %c0_i32_0 : i32, i32
  }
  func.func @transform_2(%arg0: i32, %arg1: i32) -> (i32, i32, i32) {
    %c0_i32 = arith.constant 0 : i32
    %c0_i32_0 = arith.constant 0 : i32
    %c0_i32_1 = arith.constant 0 : i32
    return %arg0, %c0_i32, %c0_i32_0 : i32, i32, i32
  }
}

</mosaic_0001>

<bundles_post_ra>
// kernel: tpu_custom_call.1
= control target key start
LH: loop header
LB: loop body
LE: loop exit
PB: predicated region body
PF: predicated region fallthrough
CT: control target
= control target key end

     0   :  { %vm84_vm0 = vcmask 261120   ;;  %s241_s0 = inlined_call_operand.vmem [shape: f32[8,32], index: 0, kind: input, shape index: {}]   ;;  %s242_s1 = inlined_call_operand.vmem [shape: s32[8,1], index: 1, kind: input, shape index: {}]   ;;  %s243_s2 = inlined_call_operand.hbm [shape: f32[1,1,1], index: 2, kind: output, shape index: {}]  }
   0x1   :  { %v72_v0 = vld [vmem:[%s241_s0] sm:$0xff] }
   0x2   :  { %7 = vsyncpa [#allocation4], 0  ;;  %v85_v1 = vsel %vm84_vm0, %v72_v0, -inf  ;;  %v198_v2 = vmov 0   ;;  %v73_v3 = vld [vmem:[%s242_s1] sm:$0xff]  ;;  %v100_v7 = vlaneseq  ;;  %v97_v12 = vsel %vm84_vm0, %v72_v0, 0.0 }
   0x3   :  { %169 = vset.pattern.permute.xlu0 %v198_v2  ;;  %vm118_vm2 = vcmask 7168   ;;  %vm70_vm3 = vcmask 0   ;;  %v199_v28 = vmov 0.0   ;;  %s200_s1 = smov [#allocation3]  }
   0x4   :  { %86 = vmax.xlane.f32.xlu0 %v85_v1  ;;  %v101_v8 = vand.u32 127, %v100_v7  ;;  %71 = vst.msk [vmem:[#allocation2] sm:$0x1] %vm70_vm3, %v199_v28  ;;  %s144_s13 = sshll.u32 %s200_s1, 4  ;;  %s145_s13 = int_to_ptr.vmem [resolvable:$true] %s144_s13 }
   0x5   :  { %s174_s14 = scalar_lea.vmem %s145_s13, 16  ;;  %s178_s15 = scalar_lea.vmem %s145_s13, 32 }
   0x6   :  { %p175_p0 = scmp.ne.s32.totalorder %s145_s13, %s174_s14  ;;  %p179_p1 = scmp.lt.s32.totalorder %s145_s13, %s145_s13 }
   0x7   :  { %p180_p2 = scmp.lt.s32.totalorder %s178_s15, %s174_s14 }
   0x9   :  { %p181_p3 = por %p180_p2, %p179_p1 }
   0xb   :  { %v117_v36 = vld [vmem:[#allocation2] sm:$0x1]  ;;  %p182_p4 = pnand %p181_p3, %p175_p0 }
  0x1a   :  { %103 = vperm.xlu0 %169, %v73_v3  }
  0x91   :  { %v87_v4 = vpop.xlane.xlu0 %86 }
  0x92   :  { %v88_v5 = vsub.f32 %v72_v0, %v87_v4 }
  0x94   :  { %v89_v6 = vmul.f32 1.442695, %v88_v5 }
  0x96   :  { %170 = vpow2.f32 %v89_v6 }
  0x99   :  { %v104_v9 = vpop.permute.xlu0 %103 }
  0x9a   :  { %vm105_vm1 = vcmp.eq.s32.totalorder %v101_v8, %v104_v9 }
  0x9b   :  { %v106_v13 = vsel %vm105_vm1, %v72_v0, 0.0 }
  0x9c   :  { %v107_v14 = vsel %vm84_vm0, %v106_v13, 0.0 }
  0xa0   :  { %v171_v10 = vpop.eup %170 }
  0xa1   :  { %v91_v11 = vsel %vm84_vm0, %v171_v10, 0.0 }
  0xa2   :  { %92 = vadd.xlane.f32.xlu1 %v91_v11 }
  0xa6   :  { %98 = vadd.xlane.f32.xlu1 %v97_v12 }
  0xaa   :  { %108 = vadd.xlane.f32.xlu1 %v107_v14 }
 0x12f   :  { %v93_v15 = vpop.xlane.xlu1 %92 }
 0x130   :  { %172 = vlog2.f32 %v93_v15 }
 0x133   :  { %v99_v16 = vpop.xlane.xlu1 %98 }
 0x134   :  { %v111_v21 = vmul.f32 0.03125, %v99_v16 }
 0x137   :  { %v109_v19 = vpop.xlane.xlu1 %108 }
 0x13a   :  { %v173_v17 = vpop.eup %172 }
 0x13b   :  { %v95_v18 = vmul.f32 0.6931472, %v173_v17 }
 0x13d   :  { %v96_v20 = vadd.f32 %v95_v18, %v87_v4 }
 0x13f   :  { %v112_v22 = vsub.f32 %v96_v20, %v111_v21  ;;  %v110_v23 = vsub.f32 %v96_v20, %v109_v19 }
 0x141   :  { %v114_v24 = vmul.f32 0.1, %v112_v22  ;;  %v113_v25 = vmul.f32 0.9, %v110_v23 }
 0x143   :  { %v115_v26 = vadd.f32 %v114_v24, %v113_v25 }
 0x145   :  { %v119_v27 = vsel %vm118_vm2, %v115_v26, 0.0 }
 0x146   :  { %120 = vadd.xlane.f32.xlu1 %v119_v27 }
 0x1d3   :  { %v121_v29 = vpop.xlane.xlu1 %120 }
 0x1d4   :  { %v122_v30 = vrot.slane %v121_v29, 4 }
 0x1d6   :  { %v123_v31 = vadd.f32 %v122_v30, %v121_v29 }
 0x1d8   :  { %v124_v32 = vrot.slane %v123_v31, 2 }
 0x1da   :  { %v125_v33 = vadd.f32 %v124_v32, %v123_v31 }
 0x1dc   :  { %v126_v34 = vrot.slane %v125_v33, 1 }
 0x1de   :  { %v127_v35 = vadd.f32 %v126_v34, %v125_v33 }
 0x1e0   :  { %164 = vpush %v127_v35 }
 0x211   :  { %s165_s0 = spop %164 }
 0x212   :  { %v129_v37 = vstv %s165_s0 }
 0x213   :  { %v130_v38 = vadd.f32 %v129_v37, %v117_v36 }
 0x215   :  { %132 = vst.msk [vmem:[#allocation2] sm:$0x1] %vm70_vm3, %v130_v38 }
 0x21c   :  { %v136_v39 = vld [vmem:[#allocation2] sm:$0x1] }
 0x21d   :  { %137 = vst.msk [vmem:[#allocation3] sm:$0x1] %vm70_vm3, %v136_v39 }
 0x21e   :  { %185 = shalt.err (!%p182_p4)
}
 0x21f   :  { %s186_s18 = scalar_lea.hbm %s243_s2, 16 }
 0x220   :  { %p187_p5 = scmp.ne.s32.totalorder %s243_s2, %s186_s18  ;;  %p190_p6 = scmp.lt.u32.totalorder %s186_s18, %s243_s2 }
 0x222   :  { %p192_p7 = pnand %p190_p6, %p187_p5 }
 0x224   :  { %195 = shalt.err (!%p192_p7)
}
 0x225   :  { %147 = dma.vmem_to_hbm [thread:$0]  %s145_s13, 16, %s243_s2, [#allocation4]  }
 0x226   :  { %196 = dma.done.wait [#allocation4], 16  }
 0x227   :  { %197 = vsyncadd [#allocation4], 4294967280 }
 0x228   :  { %151 = vsyncpa [#allocation4], 1 }

</bundles_post_ra>
